<compile_context>
chip_gen: v5e
topology: v5e:2x2
jax: 0.10.0
libtpu: 0.0.40
codegen_flags: <defaults>
</compile_context>

<pallas_src>
import functools

import numpy as np
import jax
import jax.numpy as jnp
from jax.experimental import pallas as pl
from jax.experimental.pallas import tpu as pltpu

MAX_POS = 100.0   # same constant PCNNEncoder uses for the piecewise-pool trick


# ----------------------------------------------------------------------------
# Kernel 1: PCNN hot path -- conv (3 window-tap matmuls + masked halo shifts)
#           + piecewise max pooling + bias + relu, many sentences per step.
# ----------------------------------------------------------------------------
def pcnn_kernel(emb_ref, nfirst_ref, nlast_ref, pmask_ref, w_ref, b_ref, out_ref):
    # emb_ref   : (M, C)          bf16, M = G*S*L flattened tokens
    # nfirst_ref: (M, 1)          f32, 0.0 at the first token of a sentence, else 1.0
    # nlast_ref : (M, 1)          f32, 0.0 at the last  token of a sentence, else 1.0
    # pmask_ref : (3, NS, L, 1)   f32, MAX_POS where token belongs to piece p+1 else 0
    # w_ref     : (3, C, H)       bf16 conv weight taps [left, center, right]
    # b_ref     : (1, H)          f32 conv bias
    # out_ref   : (NS, 3H)        f32 relu(piecewise max-pooled conv), piece-major
    M, _ = emb_ref.shape
    NS = out_ref.shape[0]
    H = w_ref.shape[2]
    L = M // NS

    x = emb_ref[...]                                                # (M, C) bf16
    # One matmul per window tap; the +/-1 token shift is applied to the f32
    # results with sublane rotations.  pltpu.roll requires a non-negative
    # shift, so "t+1" uses shift = M-1 (equivalent circular roll).
    y_prev = jnp.dot(x, w_ref[0], preferred_element_type=jnp.float32)  # tap k=0
    y_mid = jnp.dot(x, w_ref[1], preferred_element_type=jnp.float32)   # tap k=1
    y_next = jnp.dot(x, w_ref[2], preferred_element_type=jnp.float32)  # tap k=2
    conv = (pltpu.roll(y_prev, shift=1, axis=0) * nfirst_ref[...]      # emb[t-1]
            + y_mid
            + pltpu.roll(y_next, shift=M - 1, axis=0) * nlast_ref[...])  # emb[t+1]

    conv3 = conv.reshape(NS, L, H)                                  # (NS, L, H)
    pm = pmask_ref[...]                                             # (3, NS, L, 1)
    bias = b_ref[...]                                               # (1, H)
    cols = []
    for p in range(3):
        # exact PyTorch piecewise pooling: max_t(conv + onehot*100) - 100
        pooled = jnp.max(conv3 + pm[p], axis=1) - MAX_POS           # (NS, H)
        # conv bias after pooling: max_t(conv + b) == max_t(conv) + b
        cols.append(jnp.maximum(pooled + bias, 0.0))
    out_ref[...] = jnp.concatenate(cols, axis=1)                    # (NS, 3H)


def pcnn_encode(emb, nfirst, nlast, pmask, w3, b, G, S, L):
    """emb: (B_pad*S*L, C) bf16 -> feats (B_pad*S, 3H) f32."""
    M_total, C = emb.shape
    H = w3.shape[2]
    NS_total = M_total // L
    rows_blk = G * S * L
    return pl.pallas_call(
        pcnn_kernel,
        out_shape=jax.ShapeDtypeStruct((NS_total, 3 * H), jnp.float32),
        grid=(M_total // rows_blk,),
        in_specs=[
            pl.BlockSpec((rows_blk, C), lambda i: (i, 0)),
            pl.BlockSpec((rows_blk, 1), lambda i: (i, 0)),
            pl.BlockSpec((rows_blk, 1), lambda i: (i, 0)),
            pl.BlockSpec((3, G * S, L, 1), lambda i: (0, i, 0, 0)),
            pl.BlockSpec((3, C, H), lambda i: (0, 0, 0)),
            pl.BlockSpec((1, H), lambda i: (0, 0)),
        ],
        out_specs=pl.BlockSpec((G * S, 3 * H), lambda i: (i, 0)),
        compiler_params=pltpu.CompilerParams(
            dimension_semantics=("parallel",)),
    )(emb, nfirst, nlast, pmask, w3, b)


# ----------------------------------------------------------------------------
# Kernel 2: Extractor ('mean' reduce) + bias + row softmax for ALL bags at once.
# ----------------------------------------------------------------------------
def extractor_kernel(feats_ref, valid_ref, inv_len_ref, label_t_ref, bias_ref,
                     out_ref):
    # feats_ref  : (G*S, D) f32  per-sentence features
    # valid_ref  : (G*S, 1) f32  1.0 for real sentences, 0.0 for padded slots
    # inv_len_ref: (G, 1)   f32  1 / (#real sentences in bag)
    # label_t_ref: (D, nc)  f32  label embedding (rows permuted to kernel order)
    # bias_ref   : (1, nc)  f32
    # out_ref    : (G, nc)  f32  softmax(mean(bag) @ labels^T + bias)
    G = out_ref.shape[0]
    NSb, D = feats_ref.shape
    S = NSb // G
    feats = feats_ref[...] * valid_ref[...]                       # zero padded rows
    reduce_bag = jnp.sum(feats.reshape(G, S, D), axis=1) * inv_len_ref[...]
    scores = jnp.dot(reduce_bag, label_t_ref[...],
                     preferred_element_type=jnp.float32) + bias_ref[...]
    m = jnp.max(scores, axis=1, keepdims=True)
    e = jnp.exp(scores - m)
    out_ref[...] = e / jnp.sum(e, axis=1, keepdims=True)


def extractor_all(feats, valid, inv_len, label_t, bias, G, S):
    NS_total, D = feats.shape
    B_pad = NS_total // S
    nc = label_t.shape[1]
    return pl.pallas_call(
        extractor_kernel,
        out_shape=jax.ShapeDtypeStruct((B_pad, nc), jnp.float32),
        grid=(B_pad // G,),
        in_specs=[
            pl.BlockSpec((G * S, D), lambda i: (i, 0)),
            pl.BlockSpec((G * S, 1), lambda i: (i, 0)),
            pl.BlockSpec((G, 1), lambda i: (i, 0)),
            pl.BlockSpec((D, nc), lambda i: (0, 0)),
            pl.BlockSpec((1, nc), lambda i: (0, 0)),
        ],
        out_specs=pl.BlockSpec((G, nc), lambda i: (i, 0)),
        compiler_params=pltpu.CompilerParams(
            dimension_semantics=("parallel",)),
    )(feats, valid, inv_len, label_t, bias)


# ----------------------------------------------------------------------------
# Batched forward (Y_S with PCNN encoder, reduce='mean', position=True,
# sigmoid=False).  Dropout is identity (inference semantics).
# ----------------------------------------------------------------------------
def _round_up(x, m):
    return ((x + m - 1) // m) * m


def choose_bag_tile(num_bags, S, L):
    """Bags per grid step.  Targets ~256 matmul rows per step; keeps tiled
    block leading dims either == full extent or a multiple of 8 ((8,128) rule).
    For very long sentences raise vmem_limit_bytes or shrink the row target
    (v7x has only 64 MiB VMEM per TensorCore)."""
    g = max(1, -(-256 // (S * L)))
    if g >= num_bags:
        return num_bags, num_bags
    g = _round_up(g, 8)
    if g >= num_bags:
        return num_bags, num_bags
    return g, _round_up(num_bags, g)


@functools.partial(jax.jit, static_argnums=(9, 10, 11))
def _forward_core(params, tokens, pos1, pos2, pmask, nfirst, nlast, inv_len,
                  valid, G, S, L):
    # Embedding lookups (glue: plain JAX gathers), kept flattened + bf16.
    emb = jnp.concatenate(
        [params["word_emb"][tokens],
         params["pos1_emb"][pos1],
         params["pos2_emb"][pos2]], axis=-1)                       # (B_pad*S*L, C)
    feats = pcnn_encode(emb, nfirst, nlast, pmask,
                        params["conv_w3"], params["conv_b"], G, S, L)
    # TODO(synk): nn.Dropout omitted (inference semantics -> identity).
    y = extractor_all(feats, valid, inv_len,
                      params["label_t"], params["ext_bias"], G, S)
    return feats, y


def y_s_forward(params, bags, musks, pos1s, pos2s):
    """bags/musks/pos1s/pos2s: per-bag lists of (n_sents_i, L) int32 arrays."""
    B = len(bags)
    lens = [int(np.asarray(b).shape[0]) for b in bags]
    S = max(lens)
    L = int(np.asarray(bags[0]).shape[1])
    G, B_pad = choose_bag_tile(B, S, L)

    word_pad_idx = params["word_emb"].shape[0] - 1
    pos_pad_idx = params["pos1_emb"].shape[0] - 1

    def stack(lst, fill):
        a = np.full((B_pad, S, L), fill, dtype=np.int32)
        for i, x in enumerate(lst):
            x = np.asarray(x)
            a[i, :x.shape[0], :] = x
        return a

    tokens = jnp.asarray(stack(bags, word_pad_idx).reshape(-1))
    p1 = jnp.asarray(stack(pos1s, pos_pad_idx).reshape(-1))
    p2 = jnp.asarray(stack(pos2s, pos_pad_idx).reshape(-1))

    # piece one-hots (pre-scaled by MAX_POS); padded sentences stay all-zero
    musk_np = stack(musks, 0).reshape(B_pad * S, L)
    pm = np.zeros((3, B_pad * S, L, 1), dtype=np.float32)
    for p in range(3):
        pm[p, :, :, 0] = (musk_np == p + 1).astype(np.float32) * MAX_POS
    pmask = jnp.asarray(pm)

    # sentence-boundary masks for the conv halo (zero wrapped neighbor rows)
    tpos = np.tile(np.arange(L, dtype=np.int32), B_pad * S)
    nfirst = jnp.asarray((tpos != 0).astype(np.float32)[:, None])
    nlast = jnp.asarray((tpos != L - 1).astype(np.float32)[:, None])

    inv = np.ones((B_pad, 1), dtype=np.float32)
    val = np.zeros((B_pad, S, 1), dtype=np.float32)
    for i, l in enumerate(lens):
        inv[i, 0] = 1.0 / max(l, 1)
        val[i, :l, 0] = 1.0
    inv_len = jnp.asarray(inv)
    valid = jnp.asarray(val.reshape(B_pad * S, 1))

    feats, y = _forward_core(params, tokens, p1, p2, pmask, nfirst, nlast,
                             inv_len, valid, G, S, L)

    # feature == torch.cat(per-bag sentence features, 0) (real sentences only),
    # columns permuted back from kernel order (p*H+h) to torch order (h*3+p).
    D = feats.shape[1]
    H = D // 3
    if B_pad == B and all(l == S for l in lens):
        feats_real = feats[:B * S]
    else:
        idx = np.concatenate(
            [i * S + np.arange(l) for i, l in enumerate(lens)]).astype(np.int32)
        feats_real = feats[jnp.asarray(idx)]
    kperm = (np.arange(D) % 3) * H + (np.arange(D) // 3)
    feature = feats_real[:, jnp.asarray(kperm.astype(np.int32))]
    return feature, y[:B]


# ----------------------------------------------------------------------------
# Deterministic parameter construction (mirrors the module's __init__ shapes).
# ----------------------------------------------------------------------------
def make_params(n_word, n_pos, embed_dim, pos_dim, hidden_dim, n_class, window=3):
    C = embed_dim + 2 * pos_dim
    D = hidden_dim * 3  # PCNN -> extractor input size is hidden*3

    # word embedding (pretrain file replaced by deterministic init; pad row 0)
    word_emb = np.random.RandomState(7).uniform(
        -0.1, 0.1, (n_word + 2, embed_dim)).astype(np.float32)
    word_emb[n_word + 1] = 0.0
    # position embeddings (exact RandomState seeds from the module)
    pos1_emb = np.random.RandomState(91).uniform(
        -0.1, 0.1, (n_pos + 1, pos_dim)).astype(np.float32)
    pos2_emb = np.random.RandomState(92).uniform(
        -0.1, 0.1, (n_pos + 1, pos_dim)).astype(np.float32)
    # conv weight (H, C, 1, window) -> per-tap layout (window, C, H):
    #   conv_w3[k, c, h] == torch_w[h, c, 0, k]
    conv_w_t = np.random.RandomState(31).uniform(
        -0.1, 0.1, (hidden_dim, C, 1, window)).astype(np.float32)
    conv_w3 = np.transpose(conv_w_t[:, :, 0, :], (2, 1, 0)).copy()
    conv_b = np.zeros((1, hidden_dim), dtype=np.float32)
    # extractor label embedding (n_class, D).  Kernel features are piece-major
    # (col = p*H + h); PyTorch flattens hidden-major (col = h*3 + p).  Permute
    # the label columns once so the scores match exactly.
    label_emb = np.random.RandomState(201).uniform(
        -0.1, 0.1, (n_class, D)).astype(np.float32)
    perm = np.arange(D).reshape(hidden_dim, 3).T.reshape(-1)   # perm[p*H+h]=h*3+p
    label_t = label_emb[:, perm].T.copy()                      # (D, n_class)
    ext_bias = np.zeros((1, n_class), dtype=np.float32)
    # NOTE: Extractor.A (RandomState(211)) exists but is unused for 'mean'.

    return {
        "word_emb": jnp.asarray(word_emb, dtype=jnp.bfloat16),
        "pos1_emb": jnp.asarray(pos1_emb, dtype=jnp.bfloat16),
        "pos2_emb": jnp.asarray(pos2_emb, dtype=jnp.bfloat16),
        "conv_w3": jnp.asarray(conv_w3, dtype=jnp.bfloat16),
        "conv_b": jnp.asarray(conv_b),
        "label_t": jnp.asarray(label_t),
        "ext_bias": jnp.asarray(ext_bias),
    }


if __name__ == "__main__":
    # Small, deterministic demo shapes.
    n_word, n_pos = 50, 20
    embed_dim, pos_dim, hidden_dim, n_class = 16, 8, 32, 5
    n_bags, sents_per_bag, seq_len = 2, 3, 8

    params = make_params(n_word, n_pos, embed_dim, pos_dim, hidden_dim, n_class)

    key = jax.random.PRNGKey(0)
    bags, musks, pos1s, pos2s = [], [], [], []
    for _ in range(n_bags):
        k1, k2, k3, k4, key = jax.random.split(key, 5)
        bags.append(jax.random.randint(k1, (sents_per_bag, seq_len), 0, n_word,
                                       dtype=jnp.int32))
        musks.append(jax.random.randint(k2, (sents_per_bag, seq_len), 1, 4,
                                        dtype=jnp.int32))
        pos1s.append(jax.random.randint(k3, (sents_per_bag, seq_len), 0, n_pos,
                                        dtype=jnp.int32))
        pos2s.append(jax.random.randint(k4, (sents_per_bag, seq_len), 0, n_pos,
                                        dtype=jnp.int32))

    feature, y1_s = y_s_forward(params, bags, musks, pos1s, pos2s)
    jax.block_until_ready((feature, y1_s))

    assert feature.shape == (n_bags * sents_per_bag, hidden_dim * 3)
    assert y1_s.shape == (n_bags, n_class)
    assert bool(jnp.all(jnp.isfinite(feature)))
    assert bool(jnp.all(jnp.isfinite(y1_s)))
    # softmax rows sum to 1
    assert bool(jnp.allclose(jnp.sum(y1_s, axis=1), 1.0, atol=1e-5))
    print("KERNEL_OK")
</pallas_src>

<mosaic_0001>
module attributes {stable_mosaic.version = 11 : i64} {
  func.func @pcnn_kernel(%arg0: i32, %arg1: memref<48x32xbf16, #tpu.memory_space<vmem>>, %arg2: memref<48x1xf32, #tpu.memory_space<vmem>>, %arg3: memref<48x1xf32, #tpu.memory_space<vmem>>, %arg4: memref<3x6x8x1xf32, #tpu.memory_space<vmem>>, %arg5: memref<3x32x32xbf16, #tpu.memory_space<vmem>>, %arg6: memref<1x32xf32, #tpu.memory_space<vmem>>, %arg7: memref<6x96xf32, #tpu.memory_space<vmem>>) attributes {dimension_semantics = [#tpu.dimension_semantics<parallel>], iteration_bounds = array<i64: 1>, scalar_prefetch = 0 : i64, scratch_operands = 0 : i64, tpu.core_type = #tpu.core_type<tc>, window_params = [{transform_indices = @transform_0, window_bounds = array<i64: 48, 32>}, {transform_indices = @transform_1, window_bounds = array<i64: 48, 1>}, {transform_indices = @transform_2, window_bounds = array<i64: 48, 1>}, {transform_indices = @transform_3, window_bounds = array<i64: 3, 6, 8, 1>}, {pipeline_mode = #tpu.pipeline_mode<synchronous>, transform_indices = @transform_4, window_bounds = array<i64: 3, 32, 32>}, {pipeline_mode = #tpu.pipeline_mode<synchronous>, transform_indices = @transform_5, window_bounds = array<i64: 1, 32>}, {transform_indices = @transform_6, window_bounds = array<i64: 6, 96>}]} {
    %c0 = arith.constant 0 : index
    %c0_0 = arith.constant 0 : index
    %0 = vector.load %arg1[%c0, %c0_0] : memref<48x32xbf16, #tpu.memory_space<vmem>>, vector<48x32xbf16>
    %c0_1 = arith.constant 0 : index
    %c0_2 = arith.constant 0 : index
    %c0_3 = arith.constant 0 : index
    %1 = vector.load %arg5[%c0_1, %c0_2, %c0_3] : memref<3x32x32xbf16, #tpu.memory_space<vmem>>, vector<1x32x32xbf16>
    %2 = vector.shape_cast %1 : vector<1x32x32xbf16> to vector<32x32xbf16>
    %cst = arith.constant dense<0.000000e+00> : vector<48x32xf32>
    %3 = tpu.matmul %0, %2, %cst {dimension_numbers = #tpu.dot_dimension_numbers<[1], [0], [0], [1], [0, 0, 1, 1], [], []>} : vector<48x32xbf16>, vector<32x32xbf16>, vector<48x32xf32> -> vector<48x32xf32>
    %c1 = arith.constant 1 : index
    %c0_4 = arith.constant 0 : index
    %c0_5 = arith.constant 0 : index
    %4 = vector.load %arg5[%c1, %c0_4, %c0_5] : memref<3x32x32xbf16, #tpu.memory_space<vmem>>, vector<1x32x32xbf16>
    %5 = vector.shape_cast %4 : vector<1x32x32xbf16> to vector<32x32xbf16>
    %cst_6 = arith.constant dense<0.000000e+00> : vector<48x32xf32>
    %6 = tpu.matmul %0, %5, %cst_6 {dimension_numbers = #tpu.dot_dimension_numbers<[1], [0], [0], [1], [0, 0, 1, 1], [], []>} : vector<48x32xbf16>, vector<32x32xbf16>, vector<48x32xf32> -> vector<48x32xf32>
    %c2 = arith.constant 2 : index
    %c0_7 = arith.constant 0 : index
    %c0_8 = arith.constant 0 : index
    %7 = vector.load %arg5[%c2, %c0_7, %c0_8] : memref<3x32x32xbf16, #tpu.memory_space<vmem>>, vector<1x32x32xbf16>
    %8 = vector.shape_cast %7 : vector<1x32x32xbf16> to vector<32x32xbf16>
    %cst_9 = arith.constant dense<0.000000e+00> : vector<48x32xf32>
    %9 = tpu.matmul %0, %8, %cst_9 {dimension_numbers = #tpu.dot_dimension_numbers<[1], [0], [0], [1], [0, 0, 1, 1], [], []>} : vector<48x32xbf16>, vector<32x32xbf16>, vector<48x32xf32> -> vector<48x32xf32>
    %c1_i32 = arith.constant 1 : i32
    %10 = tpu.dynamic_rotate %3 by %c1_i32 dim 0 : vector<48x32xf32>, i32 -> vector<48x32xf32>
    %c0_10 = arith.constant 0 : index
    %c0_11 = arith.constant 0 : index
    %11 = vector.load %arg2[%c0_10, %c0_11] : memref<48x1xf32, #tpu.memory_space<vmem>>, vector<48x1xf32>
    %12 = vector.broadcast %11 : vector<48x1xf32> to vector<48x32xf32>
    %13 = arith.mulf %10, %12 : vector<48x32xf32>
    %14 = arith.addf %13, %6 : vector<48x32xf32>
    %c47_i32 = arith.constant 47 : i32
    %15 = tpu.dynamic_rotate %9 by %c47_i32 dim 0 : vector<48x32xf32>, i32 -> vector<48x32xf32>
    %c0_12 = arith.constant 0 : index
    %c0_13 = arith.constant 0 : index
    %16 = vector.load %arg3[%c0_12, %c0_13] : memref<48x1xf32, #tpu.memory_space<vmem>>, vector<48x1xf32>
    %17 = vector.broadcast %16 : vector<48x1xf32> to vector<48x32xf32>
    %18 = arith.mulf %15, %17 : vector<48x32xf32>
    %19 = arith.addf %14, %18 : vector<48x32xf32>
    %20 = vector.shape_cast %19 : vector<48x32xf32> to vector<6x8x32xf32>
    %c0_14 = arith.constant 0 : index
    %c0_15 = arith.constant 0 : index
    %c0_16 = arith.constant 0 : index
    %c0_17 = arith.constant 0 : index
    %21 = vector.load %arg4[%c0_14, %c0_15, %c0_16, %c0_17] : memref<3x6x8x1xf32, #tpu.memory_space<vmem>>, vector<3x6x8x1xf32>
    %c0_18 = arith.constant 0 : index
    %c0_19 = arith.constant 0 : index
    %22 = vector.load %arg6[%c0_18, %c0_19] : memref<1x32xf32, #tpu.memory_space<vmem>>, vector<1x32xf32>
    %23 = vector.extract_strided_slice %21 {offsets = [0, 0, 0, 0], sizes = [1, 6, 8, 1], strides = [1, 1, 1, 1]} : vector<3x6x8x1xf32> to vector<1x6x8x1xf32>
    %24 = vector.shape_cast %23 : vector<1x6x8x1xf32> to vector<6x8x1xf32>
    %25 = vector.broadcast %24 : vector<6x8x1xf32> to vector<6x8x32xf32>
    %26 = arith.addf %20, %25 : vector<6x8x32xf32>
    %cst_20 = arith.constant dense<0xFF800000> : vector<6x32xf32>
    %27 = vector.multi_reduction <maximumf>, %26, %cst_20 [1] : vector<6x8x32xf32> to vector<6x32xf32>
    %cst_21 = arith.constant 1.000000e+02 : f32
    %28 = vector.broadcast %cst_21 : f32 to vector<6x32xf32>
    %29 = arith.subf %27, %28 : vector<6x32xf32>
    %30 = vector.broadcast %22 : vector<1x32xf32> to vector<6x32xf32>
    %31 = arith.addf %29, %30 : vector<6x32xf32>
    %cst_22 = arith.constant 0.000000e+00 : f32
    %32 = vector.broadcast %cst_22 : f32 to vector<6x32xf32>
    %33 = arith.maximumf %31, %32 : vector<6x32xf32>
    %34 = vector.extract_strided_slice %21 {offsets = [1, 0, 0, 0], sizes = [1, 6, 8, 1], strides = [1, 1, 1, 1]} : vector<3x6x8x1xf32> to vector<1x6x8x1xf32>
    %35 = vector.shape_cast %34 : vector<1x6x8x1xf32> to vector<6x8x1xf32>
    %36 = vector.broadcast %35 : vector<6x8x1xf32> to vector<6x8x32xf32>
    %37 = arith.addf %20, %36 : vector<6x8x32xf32>
    %cst_23 = arith.constant dense<0xFF800000> : vector<6x32xf32>
    %38 = vector.multi_reduction <maximumf>, %37, %cst_23 [1] : vector<6x8x32xf32> to vector<6x32xf32>
    %cst_24 = arith.constant 1.000000e+02 : f32
    %39 = vector.broadcast %cst_24 : f32 to vector<6x32xf32>
    %40 = arith.subf %38, %39 : vector<6x32xf32>
    %41 = vector.broadcast %22 : vector<1x32xf32> to vector<6x32xf32>
    %42 = arith.addf %40, %41 : vector<6x32xf32>
    %cst_25 = arith.constant 0.000000e+00 : f32
    %43 = vector.broadcast %cst_25 : f32 to vector<6x32xf32>
    %44 = arith.maximumf %42, %43 : vector<6x32xf32>
    %45 = vector.extract_strided_slice %21 {offsets = [2, 0, 0, 0], sizes = [1, 6, 8, 1], strides = [1, 1, 1, 1]} : vector<3x6x8x1xf32> to vector<1x6x8x1xf32>
    %46 = vector.shape_cast %45 : vector<1x6x8x1xf32> to vector<6x8x1xf32>
    %47 = vector.broadcast %46 : vector<6x8x1xf32> to vector<6x8x32xf32>
    %48 = arith.addf %20, %47 : vector<6x8x32xf32>
    %cst_26 = arith.constant dense<0xFF800000> : vector<6x32xf32>
    %49 = vector.multi_reduction <maximumf>, %48, %cst_26 [1] : vector<6x8x32xf32> to vector<6x32xf32>
    %cst_27 = arith.constant 1.000000e+02 : f32
    %50 = vector.broadcast %cst_27 : f32 to vector<6x32xf32>
    %51 = arith.subf %49, %50 : vector<6x32xf32>
    %52 = vector.broadcast %22 : vector<1x32xf32> to vector<6x32xf32>
    %53 = arith.addf %51, %52 : vector<6x32xf32>
    %cst_28 = arith.constant 0.000000e+00 : f32
    %54 = vector.broadcast %cst_28 : f32 to vector<6x32xf32>
    %55 = arith.maximumf %53, %54 : vector<6x32xf32>
    %56 = tpu.concatenate %33, %44, %55 in 1 : vector<6x32xf32>, vector<6x32xf32>, vector<6x32xf32> -> vector<6x96xf32>
    %c0_29 = arith.constant 0 : index
    %c0_30 = arith.constant 0 : index
    %57 = vector.load %arg7[%c0_29, %c0_30] : memref<6x96xf32, #tpu.memory_space<vmem>>, vector<6x96xf32>
    tpu.vector_store %arg7[%c0_29, %c0_30], %56 {strides = array<i32>} : memref<6x96xf32, #tpu.memory_space<vmem>>, vector<6x96xf32>,
    return
  }
  func.func @transform_0(%arg0: i32) -> (i32, i32) {
    %c0_i32 = arith.constant 0 : i32
    %c0_i32_0 = arith.constant 0 : i32
    return %arg0, %c0_i32 : i32, i32
  }
  func.func @transform_1(%arg0: i32) -> (i32, i32) {
    %c0_i32 = arith.constant 0 : i32
    %c0_i32_0 = arith.constant 0 : i32
    return %arg0, %c0_i32 : i32, i32
  }
  func.func @transform_2(%arg0: i32) -> (i32, i32) {
    %c0_i32 = arith.constant 0 : i32
    %c0_i32_0 = arith.constant 0 : i32
    return %arg0, %c0_i32 : i32, i32
  }
  func.func @transform_3(%arg0: i32) -> (i32, i32, i32, i32) {
    %c0_i32 = arith.constant 0 : i32
    %c0_i32_0 = arith.constant 0 : i32
    %c0_i32_1 = arith.constant 0 : i32
    %c0_i32_2 = arith.constant 0 : i32
    return %c0_i32, %arg0, %c0_i32_0, %c0_i32_1 : i32, i32, i32, i32
  }
  func.func @transform_4(%arg0: i32) -> (i32, i32, i32) {
    %c0_i32 = arith.constant 0 : i32
    %c0_i32_0 = arith.constant 0 : i32
    %c0_i32_1 = arith.constant 0 : i32
    %c0_i32_2 = arith.constant 0 : i32
    return %c0_i32, %c0_i32_0, %c0_i32_1 : i32, i32, i32
  }
  func.func @transform_5(%arg0: i32) -> (i32, i32) {
    %c0_i32 = arith.constant 0 : i32
    %c0_i32_0 = arith.constant 0 : i32
    %c0_i32_1 = arith.constant 0 : i32
    return %c0_i32, %c0_i32_0 : i32, i32
  }
  func.func @transform_6(%arg0: i32) -> (i32, i32) {
    %c0_i32 = arith.constant 0 : i32
    %c0_i32_0 = arith.constant 0 : i32
    return %arg0, %c0_i32 : i32, i32
  }
}

module attributes {stable_mosaic.version = 11 : i64} {
  func.func @extractor_kernel(%arg0: i32, %arg1: memref<6x96xf32, #tpu.memory_space<vmem>>, %arg2: memref<6x1xf32, #tpu.memory_space<vmem>>, %arg3: memref<2x1xf32, #tpu.memory_space<vmem>>, %arg4: memref<96x5xf32, #tpu.memory_space<vmem>>, %arg5: memref<1x5xf32, #tpu.memory_space<vmem>>, %arg6: memref<2x5xf32, #tpu.memory_space<vmem>>) attributes {dimension_semantics = [#tpu.dimension_semantics<parallel>], iteration_bounds = array<i64: 1>, scalar_prefetch = 0 : i64, scratch_operands = 0 : i64, tpu.core_type = #tpu.core_type<tc>, window_params = [{transform_indices = @transform_0, window_bounds = array<i64: 6, 96>}, {transform_indices = @transform_1, window_bounds = array<i64: 6, 1>}, {transform_indices = @transform_2, window_bounds = array<i64: 2, 1>}, {pipeline_mode = #tpu.pipeline_mode<synchronous>, transform_indices = @transform_3, window_bounds = array<i64: 96, 5>}, {pipeline_mode = #tpu.pipeline_mode<synchronous>, transform_indices = @transform_4, window_bounds = array<i64: 1, 5>}, {transform_indices = @transform_5, window_bounds = array<i64: 2, 5>}]} {
    %c0 = arith.constant 0 : index
    %c0_0 = arith.constant 0 : index
    %0 = vector.load %arg1[%c0, %c0_0] : memref<6x96xf32, #tpu.memory_space<vmem>>, vector<6x96xf32>
    %c0_1 = arith.constant 0 : index
    %c0_2 = arith.constant 0 : index
    %1 = vector.load %arg2[%c0_1, %c0_2] : memref<6x1xf32, #tpu.memory_space<vmem>>, vector<6x1xf32>
    %2 = vector.broadcast %1 : vector<6x1xf32> to vector<6x96xf32>
    %3 = arith.mulf %0, %2 : vector<6x96xf32>
    %4 = vector.shape_cast %3 : vector<6x96xf32> to vector<2x3x96xf32>
    %cst = arith.constant dense<0.000000e+00> : vector<2x96xf32>
    %5 = vector.multi_reduction <add>, %4, %cst [1] : vector<2x3x96xf32> to vector<2x96xf32>
    %c0_3 = arith.constant 0 : index
    %c0_4 = arith.constant 0 : index
    %6 = vector.load %arg3[%c0_3, %c0_4] : memref<2x1xf32, #tpu.memory_space<vmem>>, vector<2x1xf32>
    %7 = vector.broadcast %6 : vector<2x1xf32> to vector<2x96xf32>
    %8 = arith.mulf %5, %7 : vector<2x96xf32>
    %c0_5 = arith.constant 0 : index
    %c0_6 = arith.constant 0 : index
    %9 = vector.load %arg4[%c0_5, %c0_6] : memref<96x5xf32, #tpu.memory_space<vmem>>, vector<96x5xf32>
    %cst_7 = arith.constant dense<0.000000e+00> : vector<2x5xf32>
    %10 = tpu.matmul %8, %9, %cst_7 {dimension_numbers = #tpu.dot_dimension_numbers<[1], [0], [0], [1], [0, 0, 1, 1], [], []>} : vector<2x96xf32>, vector<96x5xf32>, vector<2x5xf32> -> vector<2x5xf32>
    %c0_8 = arith.constant 0 : index
    %c0_9 = arith.constant 0 : index
    %11 = vector.load %arg5[%c0_8, %c0_9] : memref<1x5xf32, #tpu.memory_space<vmem>>, vector<1x5xf32>
    %12 = vector.broadcast %11 : vector<1x5xf32> to vector<2x5xf32>
    %13 = arith.addf %10, %12 : vector<2x5xf32>
    %cst_10 = arith.constant dense<0xFF800000> : vector<2xf32>
    %14 = vector.multi_reduction <maximumf>, %13, %cst_10 [1] : vector<2x5xf32> to vector<2xf32>
    %15 = vector.shape_cast %14 : vector<2xf32> to vector<2x1xf32>
    %16 = vector.broadcast %15 : vector<2x1xf32> to vector<2x5xf32>
    %17 = arith.subf %13, %16 : vector<2x5xf32>
    %18 = math.exp %17 : vector<2x5xf32>
    %cst_11 = arith.constant dense<0.000000e+00> : vector<2xf32>
    %19 = vector.multi_reduction <add>, %18, %cst_11 [1] : vector<2x5xf32> to vector<2xf32>
    %20 = vector.shape_cast %19 : vector<2xf32> to vector<2x1xf32>
    %21 = vector.broadcast %20 : vector<2x1xf32> to vector<2x5xf32>
    %22 = arith.divf %18, %21 : vector<2x5xf32>
    %c0_12 = arith.constant 0 : index
    %c0_13 = arith.constant 0 : index
    %23 = vector.load %arg6[%c0_12, %c0_13] : memref<2x5xf32, #tpu.memory_space<vmem>>, vector<2x5xf32>
    tpu.vector_store %arg6[%c0_12, %c0_13], %22 {strides = array<i32>} : memref<2x5xf32, #tpu.memory_space<vmem>>, vector<2x5xf32>,
    return
  }
  func.func @transform_0(%arg0: i32) -> (i32, i32) {
    %c0_i32 = arith.constant 0 : i32
    %c0_i32_0 = arith.constant 0 : i32
    return %arg0, %c0_i32 : i32, i32
  }
  func.func @transform_1(%arg0: i32) -> (i32, i32) {
    %c0_i32 = arith.constant 0 : i32
    %c0_i32_0 = arith.constant 0 : i32
    return %arg0, %c0_i32 : i32, i32
  }
  func.func @transform_2(%arg0: i32) -> (i32, i32) {
    %c0_i32 = arith.constant 0 : i32
    %c0_i32_0 = arith.constant 0 : i32
    return %arg0, %c0_i32 : i32, i32
  }
  func.func @transform_3(%arg0: i32) -> (i32, i32) {
    %c0_i32 = arith.constant 0 : i32
    %c0_i32_0 = arith.constant 0 : i32
    %c0_i32_1 = arith.constant 0 : i32
    return %c0_i32, %c0_i32_0 : i32, i32
  }
  func.func @transform_4(%arg0: i32) -> (i32, i32) {
    %c0_i32 = arith.constant 0 : i32
    %c0_i32_0 = arith.constant 0 : i32
    %c0_i32_1 = arith.constant 0 : i32
    return %c0_i32, %c0_i32_0 : i32, i32
  }
  func.func @transform_5(%arg0: i32) -> (i32, i32) {
    %c0_i32 = arith.constant 0 : i32
    %c0_i32_0 = arith.constant 0 : i32
    return %arg0, %c0_i32 : i32, i32
  }
}

</mosaic_0001>

<bundles_post_ra>
// kernel: _forward_core.3
= control target key start
LH: loop header
LB: loop body
LE: loop exit
PB: predicated region body
PF: predicated region fallthrough
CT: control target
= control target key end

     0   :  { %v193_v1 = vmov 0   ;;  %s279_s0 = inlined_call_operand.vmem [shape: f32[6,96], index: 0, kind: input, shape index: {}]   ;;  %s280_s1 = inlined_call_operand.vmem [shape: f32[6,1], index: 1, kind: input, shape index: {}]   ;;  %s281_s2 = inlined_call_operand.vmem [shape: f32[2,1], index: 2, kind: input, shape index: {}]   ;;  %s282_s3 = inlined_call_operand.vmem [shape: f32[96,5], index: 3, kind: input, shape index: {}]   ;;  %s283_s4 = inlined_call_operand.vmem [shape: f32[1,5], index: 4, kind: input, shape index: {}]   ;;  %s284_s5 = inlined_call_operand.hbm [shape: f32[2,5], index: 5, kind: output, shape index: {}]  }
   0x1   :  { %v22_v0 = vld [vmem:[%s280_s1] sm:$0x3f]  ;;  %161 = vset.pattern.permute.xlu0 %v193_v1 }
   0x2   :  { %10 = vsyncpa [#allocation3], 0  ;;  %25 = vperm.xlu0 %161, %v22_v0   ;;  %v62_v2 = vld [vmem:[%s281_s2] sm:$0x3]  ;;  %v83_v3 = vld [vmem:[%s282_s3 + $0x58] sm:$0xff]  ;;  %vm47_vm0 = vcmask 780288  }
   0x3   :  { %100 = vmatpush.msra.mxu0 %v83_v3  ;;  %v82_v4 = vld [vmem:[%s282_s3 + $0x50] sm:$0xff]  ;;  %v81_v5 = vld [vmem:[%s282_s3 + $0x48] sm:$0xff]  ;;  %v80_v6 = vld [vmem:[%s282_s3 + $0x40] sm:$0xff]  ;;  %vm91_vm1 = vcmask 1041409   ;;  %vm93_vm2 = vcmask 785408   ;;  %vm116_vm3 = vcmask 33792  }
   0x4   :  { %v79_v7 = vld [vmem:[%s282_s3 + $0x38] sm:$0xff]  ;;  %v78_v8 = vld [vmem:[%s282_s3 + $0x30] sm:$0xff]  ;;  %v21_v9 = vld [vmem:[%s279_s0] sm:$0x3f]  ;;  %s149_s24 = sshll.u32 %s284_s5, 4  ;;  %s150_s24 = int_to_ptr.hbm [resolvable:$true] %s149_s24 }
   0x5   :  { %101 = vmatpush.msra.mxu0 %v82_v4  ;;  %v77_v10 = vld [vmem:[%s282_s3 + $0x28] sm:$0xff]  ;;  %v76_v12 = vld [vmem:[%s282_s3 + $0x20] sm:$0xff]  ;;  %v75_v14 = vld [vmem:[%s282_s3 + $0x18] sm:$0xff] }
   0x6   :  { %v74_v17 = vld [vmem:[%s282_s3 + $0x10] sm:$0xff]  ;;  %v73_v18 = vld [vmem:[%s282_s3 + $0x8] sm:$0xff]  ;;  %v72_v19 = vld [vmem:[%s282_s3] sm:$0xff] }
   0x7   :  { %102 = vmatpush.msra.mxu0 %v81_v5  ;;  %v162_v45 = vld [vmem:[%s283_s4] ss:$0 sm:$0xff]  ;;  %s194_s4 = smov [#allocation2]  }
   0x8   :  { %s147_s21 = sshll.u32 %s194_s4, 4  ;;  %s148_s21 = int_to_ptr.vmem [resolvable:$true] %s147_s21 }
   0x9   :  { %103 = vmatpush.msra.mxu0 %v80_v6 }
   0xa   :  { %65 = vperm.xlu0 %161, %v62_v2  }
   0xb   :  { %104 = vmatpush.msra.mxu0 %v79_v7 }
   0xd   :  { %105 = vmatpush.msra.mxu0 %v78_v8 }
   0xf   :  { %106 = vmatpush.msra.mxu0 %v77_v10 }
  0x11   :  { %107 = vmatpush.msra.mxu0 %v76_v12 }
  0x13   :  { %108 = vmatpush.msra.mxu0 %v75_v14 }
  0x15   :  { %109 = vmatpush.msra.mxu0 %v74_v17 }
  0x17   :  { %110 = vmatpush.msra.mxu0 %v73_v18 }
  0x19   :  { %111 = vmatpush.msra.mxu0 %v72_v19 }
  0x74   :  { %v26_v11 = vpop.permute.xlu0 %25 }
  0x75   :  { %v28_v13 = vmul.f32 %v26_v11, %v21_v9 }
  0x77   :  { %35 = vst [vmem:[#allocation1] ss:$9 sm:$0xff] %v28_v13  ;;  %v30_v15 = vrot.slane %v28_v13, 1  ;;  %v31_v16 = vrot.slane %v28_v13, 2  ;;  %v32_v20 = vrot.slane %v28_v13, 3  ;;  %v33_v21 = vrot.slane %v28_v13, 4 }
  0x78   :  { %v34_v23 = vrot.slane %v28_v13, 5 }
  0x79   :  { %37 = vst [vmem:[#allocation1 + $0x1] ss:$9 sm:$0xff] %v30_v15 }
  0x7a   :  { %39 = vst [vmem:[#allocation1 + $0x2] ss:$9 sm:$0xff] %v31_v16 }
  0x7c   :  { %v66_v36 = vpop.permute.xlu0 %65 }
  0x7d   :  { %v67_v40 = vrot.slane %v66_v36, 1 }
  0x81   :  { %v40_v22 = vld [vmem:[#allocation1] sm:$0xff] }
  0x82   :  { %41 = vst [vmem:[#allocation1] ss:$9 sm:$0xff] %v32_v20  ;;  %v48_v24 = vsel %vm47_vm0, %v40_v22, 0.0 }
  0x83   :  { %42 = vst [vmem:[#allocation1 + $0x1] ss:$9 sm:$0xff] %v33_v21  ;;  %v49_v25 = vrot.slane %v48_v24, 4 }
  0x84   :  { %43 = vst [vmem:[#allocation1 + $0x2] ss:$9 sm:$0xff] %v34_v23 }
  0x85   :  { %v50_v26 = vadd.f32 %v49_v25, %v48_v24 }
  0x87   :  { %v51_v28 = vrot.slane %v50_v26, 2 }
  0x89   :  { %v52_v31 = vadd.f32 %v51_v28, %v50_v26 }
  0x8b   :  { %v44_v27 = vld [vmem:[#allocation1] sm:$0xff]  ;;  %v53_v34 = vrot.slane %v52_v31, 1 }
  0x8c   :  { %v55_v29 = vsel %vm47_vm0, %v44_v27, 0.0 }
  0x8d   :  { %v56_v30 = vrot.slane %v55_v29, 4  ;;  %v54_v38 = vadd.f32 %v53_v34, %v52_v31 }
  0x8f   :  { %v57_v32 = vadd.f32 %v56_v30, %v55_v29  ;;  %v70_v42 = vmul.f32 %v66_v36, %v54_v38 }
  0x91   :  { %v58_v33 = vrot.slane %v57_v32, 2 }
  0x93   :  { %v59_v35 = vadd.f32 %v58_v33, %v57_v32 }
  0x95   :  { %v60_v37 = vrot.slane %v59_v35, 1 }
  0x97   :  { %v61_v39 = vadd.f32 %v60_v37, %v59_v35 }
  0x99   :  { %v71_v41 = vmul.f32 %v67_v40, %v61_v39 }
  0x9b   :  { %v90_v43 = vrot.slane %v71_v41, 7 }
  0x9d   :  { %v92_v44 = vsel %vm91_vm1, %v90_v43, %v70_v42 }
  0x9e   :  { %158 = vmatmul.msk.f32.vlgmr.msra.gmra.mxu0 %vm93_vm2, %v92_v44 }
 0x11b   :  { %v113_v46 = vpop.f32.mrf.mxu0 }
 0x11c   :  { %v114_v47 = vadd.f32 %v162_v45, %v113_v46 }
 0x11e   :  { %v117_v48 = vsel %vm116_vm3, %v114_v47, -inf }
 0x11f   :  { %118 = vmax.xlane.f32.xlu1 %v117_v48 }
 0x192   :  { %v119_v49 = vpop.xlane.xlu1 %118 }
 0x193   :  { %v120_v50 = vsub.f32 %v114_v47, %v119_v49 }
 0x195   :  { %v121_v51 = vmul.f32 1.442695, %v120_v50 }
 0x197   :  { %163 = vpow2.f32 %v121_v51 }
 0x19d   :  { %v164_v52 = vpop.eup %163 }
 0x19e   :  { %v123_v53 = vsel %vm116_vm3, %v164_v52, 0.0 }
 0x19f   :  { %124 = vadd.xlane.f32.xlu1 %v123_v53 }
 0x212   :  { %v125_v54 = vpop.xlane.xlu1 %124 }
 0x213   :  { %165 = vrcp.f32 %v125_v54  ;;  %v137_v58 = vand.u32 2147483648, %v125_v54  ;;  %v135_v60 = vand.u32 2147483647, %v125_v54  ;;  %vm131_vm5 = vweird.f32 %v125_v54 }
 0x215   :  { %v138_v62 = vor.u32 1.1754944e-38, %v137_v58  ;;  %vm136_vm7 = vcmp.eq.f32.partialorder %v135_v60, 8.507059e+37 }
 0x219   :  { %v166_v55 = vpop.eup %165 }
 0x21a   :  { %v127_v56 = vmul.f32 %v166_v55, %v125_v54  ;;  %vm132_vm4 = vweird.f32 %v166_v55 }
 0x21b   :  { %vm133_vm6 = vmor %vm131_vm5, %vm132_vm4 }
 0x21c   :  { %v128_v57 = vsub.f32 1.0, %v127_v56 }
 0x21e   :  { %v129_v59 = vmul.f32 %v166_v55, %v128_v57 }
 0x220   :  { %v130_v61 = vadd.f32 %v166_v55, %v129_v59 }
 0x222   :  { %v134_v63 = vsel %vm133_vm6, %v166_v55, %v130_v61 }
 0x223   :  { %v139_v0 = vsel %vm136_vm7, %v138_v62, %v134_v63 }
 0x224   :  { %v140_v1 = vmul.f32 %v164_v52, %v139_v0 }
 0x226   :  { %141 = vst.msk [vmem:[#allocation2] sm:$0x3] %vm116_vm3, %v140_v1 }
 0x227   :  { %152 = dma.vmem_to_hbm [thread:$0]  %s148_s21, 32, %s150_s24, [#allocation3]  }
 0x228   :  { %191 = dma.done.wait [#allocation3], 32  }
 0x229   :  { %192 = vsyncadd [#allocation3], 4294967264 }
 0x22a   :  { %157 = vsyncpa [#allocation3], 1 }

// kernel: _forward_core.2
= control target key start
LH: loop header
LB: loop body
LE: loop exit
PB: predicated region body
PF: predicated region fallthrough
CT: control target
= control target key end

     0   :  { %v769_v0 = vmov 0   ;;  %vm61_vm0 = vcmask 261120   ;;  %v183_v59 = vlaneseq  ;;  %vm618_vm3 = vcmask 1041409   ;;  %s771_s20 = smov 32   ;;  %s1120_s1 = inlined_call_operand.vmem [shape: f32[48,1], index: 1, kind: input, shape index: {}]   ;;  %s1121_s4 = inlined_call_operand.vmem [shape: bf16[3,32,32], index: 4, kind: input, shape index: {}]   ;;  %s1122_s0 = inlined_call_operand.vmem [shape: bf16[48,32], index: 0, kind: input, shape index: {}]   ;;  %s1123_s2 = inlined_call_operand.vmem [shape: f32[48,1], index: 2, kind: input, shape index: {}]   ;;  %s1124_s3 = inlined_call_operand.vmem [shape: f32[3,6,8,1], index: 3, kind: input, shape index: {}]   ;;  %s1125_s5 = inlined_call_operand.vmem [shape: f32[1,32], index: 5, kind: input, shape index: {}]   ;;  %s1126_s6 = inlined_call_operand.vmem [shape: f32[6,96], index: 6, kind: output, shape index: {}]  }
   0x1   :  { %767 = vset.pattern.permute.xlu2 %v769_v0  ;;  %766 = vset.pattern.permute.xlu1 %v769_v0  ;;  %v196_v1 = vld [vmem:[%s1120_s1 + $0x20] sm:$0xff]  ;;  %v194_v2 = vld [vmem:[%s1120_s1 + $0x10] sm:$0xff]  ;;  %v755_v4 = vld [vmem:[%s1121_s4 + $0x8] sm:$0xff]  ;;  %vm621_vm4 = vcmask 1042434   ;;  %vm624_vm5 = vcmask 1043459   ;;  %vm627_vm6 = vcmask 1044484  }
   0x2   :  { %v192_v3 = vld [vmem:[%s1120_s1] sm:$0xff]  ;;  %765 = vset.pattern.permute.xlu0 %v769_v0  ;;  %220 = vperm.xlu2 %767, %v196_v1   ;;  %v757_v5 = vld [vmem:[%s1121_s4 + $0x18] sm:$0xff]  ;;  %v759_v6 = vld [vmem:[%s1121_s4 + $0x28] sm:$0xff]  ;;  %v955_v63 = vshrl.u32 %v183_v59, 7  ;;  %vm630_vm7 = vcmask 1045509   ;;  %vm672_vm8 = vcmask 523264  }
   0x3   :  { %210 = vperm.xlu1 %766, %v194_v2   ;;  %200 = vperm.xlu0 %765, %v192_v3   ;;  %v754_v7 = vld [vmem:[%s1121_s4] sm:$0xff]  ;;  %v756_v8 = vld [vmem:[%s1121_s4 + $0x10] sm:$0xff]  ;;  %v197_v10 = vld [vmem:[%s1120_s1 + $0x28] sm:$0xff]  ;;  %vm674_vm9 = vcmask 783360  }
   0x4   :  { %77 = vmatpush.bf16.msra.mxu0 %v755_v4  ;;  %760 = vmatpush.bf16.msra.mxu3 %v755_v4  ;;  %v758_v9 = vld [vmem:[%s1121_s4 + $0x20] sm:$0xff]  ;;  %v195_v11 = vld [vmem:[%s1120_s1 + $0x18] sm:$0xff]  ;;  %v193_v12 = vld [vmem:[%s1120_s1 + $0x8] sm:$0xff]  ;;  %vm185_vm1 = vcmp.lt.s32.totalorder %v955_v63, 1  ;;  %vm246_vm2 = vcmp.lt.s32.totalorder %v955_v63, 7 }
   0x5   :  { %118 = vmatpush.bf16.msra.mxu1 %v757_v5  ;;  %159 = vmatpush.bf16.msra.mxu2 %v759_v6  ;;  %v751_v13 = vld [vmem:[%s1122_s0] sm:$0xff]  ;;  %v752_v14 = vld [vmem:[%s1122_s0 + $0x8] sm:$0xff]  ;;  %v255_v15 = vld [vmem:[%s1123_s2 + $0x10] sm:$0xff] }
   0x6   :  { %v254_v16 = vld [vmem:[%s1123_s2 + $0x8] sm:$0xff]  ;;  %v253_v17 = vld [vmem:[%s1123_s2] sm:$0xff]  ;;  %v256_v20 = vld [vmem:[%s1123_s2 + $0x18] sm:$0xff] }
   0x7   :  { %v258_v18 = vld [vmem:[%s1123_s2 + $0x28] sm:$0xff]  ;;  %v257_v19 = vld [vmem:[%s1123_s2 + $0x20] sm:$0xff]  ;;  %v753_v21 = vld [vmem:[%s1122_s0 + $0x10] sm:$0xff] }
   0x8   :  { %78 = vmatpush.bf16.msra.mxu0 %v754_v7  ;;  %761 = vmatpush.bf16.msra.mxu3 %v754_v7  ;;  %v309_v22 = vld [vmem:[%s1124_s3 + $0x40] sm:$0xff]  ;;  %v308_v23 = vld [vmem:[%s1124_s3 + $0x38] sm:$0xff]  ;;  %v310_v25 = vld [vmem:[%s1124_s3 + $0x48] sm:$0xff] }
   0x9   :  { %119 = vmatpush.bf16.msra.mxu1 %v756_v8  ;;  %160 = vmatpush.bf16.msra.mxu2 %v758_v9  ;;  %v301_v24 = vld [vmem:[%s1124_s3] sm:$0xff]  ;;  %v307_v26 = vld [vmem:[%s1124_s3 + $0x30] sm:$0xff]  ;;  %v314_v27 = vld [vmem:[%s1124_s3 + $0x68] sm:$0xff] }
   0xa   :  { %225 = vperm.xlu2 %767, %v197_v10   ;;  %v313_v28 = vld [vmem:[%s1124_s3 + $0x60] sm:$0xff]  ;;  %v311_v29 = vld [vmem:[%s1124_s3 + $0x50] sm:$0xff]  ;;  %v312_v32 = vld [vmem:[%s1124_s3 + $0x58] sm:$0xff] }
   0xb   :  { %215 = vperm.xlu1 %766, %v195_v11   ;;  %205 = vperm.xlu0 %765, %v193_v12   ;;  %v315_v30 = vld [vmem:[%s1124_s3 + $0x70] sm:$0xff]  ;;  %v317_v31 = vld [vmem:[%s1124_s3 + $0x80] sm:$0xff]  ;;  %v316_v33 = vld [vmem:[%s1124_s3 + $0x78] sm:$0xff] }
   0xc   :  { %700 = vmatmul.msk.bf16.vlgmr.msra.gmra.mxu0 %vm61_vm0, %v751_v13  ;;  %701 = vmatmul.msk.bf16.vlgmr.msra.gmra.mxu3 %vm61_vm0, %v752_v14  ;;  %v303_v34 = vld [vmem:[%s1124_s3 + $0x10] sm:$0xff]  ;;  %v302_v35 = vld [vmem:[%s1124_s3 + $0x8] sm:$0xff]  ;;  %v305_v38 = vld [vmem:[%s1124_s3 + $0x20] sm:$0xff] }
   0xd   :  { %715 = vmatmul.msk.bf16.vlgmr.msra.gmra.mxu1 %vm61_vm0, %v751_v13  ;;  %730 = vmatmul.msk.bf16.vlgmr.msra.gmra.mxu2 %vm61_vm0, %v751_v13  ;;  %v318_v36 = vld [vmem:[%s1124_s3 + $0x88] sm:$0xff]  ;;  %v304_v39 = vld [vmem:[%s1124_s3 + $0x18] sm:$0xff] }
   0xe   :  { %v306_v37 = vld [vmem:[%s1124_s3 + $0x28] sm:$0xff] }
  0x12   :  { %271 = vperm.xlu2 %767, %v255_v15  }
  0x13   :  { %266 = vperm.xlu1 %766, %v254_v16   ;;  %261 = vperm.xlu0 %765, %v253_v17  }
  0x1a   :  { %286 = vperm.xlu2 %767, %v258_v18  }
  0x1b   :  { %281 = vperm.xlu1 %766, %v257_v19   ;;  %276 = vperm.xlu0 %765, %v256_v20  }
  0x1c   :  { %702 = vmatmul.msk.bf16.gmra.mxu3 %vm61_vm0, %v753_v21 }
  0x1d   :  { %716 = vmatmul.msk.bf16.gmra.mxu1 %vm61_vm0, %v752_v14  ;;  %731 = vmatmul.msk.bf16.gmra.mxu2 %vm61_vm0, %v752_v14 }
  0x22   :  { %431 = vperm.xlu2 %767, %v309_v22  }
  0x23   :  { %426 = vperm.xlu1 %766, %v308_v23   ;;  %322 = vperm.xlu0 %765, %v301_v24  }
  0x2a   :  { %436 = vperm.xlu2 %767, %v310_v25  }
  0x2b   :  { %421 = vperm.xlu1 %766, %v307_v26   ;;  %522 = vperm.xlu0 %765, %v314_v27  }
  0x2d   :  { %717 = vmatmul.msk.bf16.gmra.mxu1 %vm61_vm0, %v753_v21  ;;  %732 = vmatmul.msk.bf16.gmra.mxu2 %vm61_vm0, %v753_v21 }
  0x32   :  { %517 = vperm.xlu2 %767, %v313_v28  }
  0x33   :  { %441 = vperm.xlu1 %766, %v311_v29   ;;  %527 = vperm.xlu0 %765, %v315_v30  }
  0x3a   :  { %537 = vperm.xlu2 %767, %v317_v31  }
  0x3b   :  { %446 = vperm.xlu1 %766, %v312_v32   ;;  %532 = vperm.xlu0 %765, %v316_v33  }
  0x42   :  { %332 = vperm.xlu2 %767, %v303_v34  }
  0x43   :  { %327 = vperm.xlu1 %766, %v302_v35   ;;  %542 = vperm.xlu0 %765, %v318_v36  }
  0x4a   :  { %347 = vperm.xlu2 %767, %v306_v37  }
  0x4b   :  { %342 = vperm.xlu1 %766, %v305_v38   ;;  %337 = vperm.xlu0 %765, %v304_v39  }
  0x5c   :  { %v933_v40 = vpop.permute.xlu2 %220 }
  0x64   :  { %v935_v41 = vpop.permute.xlu2 %225 }
  0x6c   :  { %v937_v42 = vpop.permute.xlu2 %271 }
  0x74   :  { %v939_v45 = vpop.permute.xlu2 %286 }
  0x75   :  { %v211_v43 = vpop.permute.xlu1 %210  ;;  %v201_v44 = vpop.permute.xlu0 %200 }
  0x7c   :  { %v943_v50 = vpop.permute.xlu2 %431 }
  0x7d   :  { %v941_v46 = vpop.permute.xlu1 %215  ;;  %v206_v47 = vpop.permute.xlu0 %205 }
  0x84   :  { %v949_v56 = vpop.permute.xlu2 %436 }
  0x85   :  { %v267_v48 = vpop.permute.xlu1 %266  ;;  %v262_v49 = vpop.permute.xlu0 %261 }
  0x89   :  { %v80_v52 = vpop.f32.mrf.mxu0 }
  0x8a   :  { %v121_v51 = vpop.f32.mrf.mxu1  ;;  %v177_v2 = vrot.slane %v80_v52, 7 }
  0x8c   :  { %v518_v4 = vpop.permute.xlu2 %517 }
  0x8d   :  { %v945_v53 = vpop.permute.xlu1 %281  ;;  %v947_v54 = vpop.permute.xlu0 %276 }
  0x8f   :  { %v85_v55 = vpop.f32.mrf.mxu3 }
  0x90   :  { %v951_v57 = vpop.f32.mrf.mxu2  ;;  %v179_v15 = vrot.slane %v85_v55, 7 }
  0x91   :  { %v82_v62 = vpop.f32.mrf.mxu0  ;;  %v240_v26 = vrot.slane %v951_v57, 1 }
  0x92   :  { %v123_v58 = vpop.f32.mrf.mxu1  ;;  %v178_v3 = vrot.slane %v82_v62, 7 }
  0x94   :  { %v190_v6 = vsel %vm185_vm1, %v177_v2, %v178_v3  ;;  %v965_v18 = vpop.permute.xlu2 %537  ;;  %v189_v24 = vsel %vm185_vm1, %v178_v3, %v179_v15 }
  0x95   :  { %v427_v60 = vpop.permute.xlu1 %426  ;;  %v953_v61 = vpop.permute.xlu0 %322  ;;  %v229_v10 = vmul.f32 %v206_v47, %v190_v6  ;;  %v230_v33 = vmul.f32 %v211_v43, %v189_v24 }
  0x97   :  { %v87_v0 = vpop.f32.mrf.mxu3  ;;  %v235_v17 = vadd.f32 %v229_v10, %v123_v58 }
  0x98   :  { %v164_v1 = vpop.f32.mrf.mxu2  ;;  %v180_v23 = vrot.slane %v87_v0, 7 }
  0x99   :  { %v241_v12 = vrot.slane %v164_v1, 1 }
  0x9a   :  { %v126_v5 = vpop.f32.mrf.mxu1  ;;  %v188_v36 = vsel %vm185_vm1, %v179_v15, %v180_v23 }
  0x9b   :  { %v251_v32 = vsel %vm246_vm2, %v240_v26, %v241_v12  ;;  %v236_v47 = vadd.f32 %v230_v33, %v126_v5 }
  0x9c   :  { %v289_v58 = vmul.f32 %v262_v49, %v251_v32 }
  0x9d   :  { %v422_v7 = vpop.permute.xlu1 %421  ;;  %v523_v8 = vpop.permute.xlu0 %522 }
  0x9f   :  { %v90_v9 = vpop.f32.mrf.mxu3 }
  0xa0   :  { %v167_v11 = vpop.f32.mrf.mxu2  ;;  %v181_v27 = vrot.slane %v90_v9, 7 }
  0xa1   :  { %v242_v13 = vrot.slane %v167_v11, 1 }
  0xa2   :  { %v961_v14 = vpop.f32.mrf.mxu1  ;;  %v187_v43 = vsel %vm185_vm1, %v180_v23, %v181_v27 }
  0xa3   :  { %v250_v16 = vsel %vm246_vm2, %v241_v12, %v242_v13  ;;  %v232_v5 = vmul.f32 %v933_v40, %v187_v43 }
  0xa4   :  { %v290_v19 = vmul.f32 %v267_v48, %v250_v16 }
  0xa5   :  { %v967_v20 = vpop.permute.xlu1 %441  ;;  %v528_v21 = vpop.permute.xlu0 %527 }
  0xa6   :  { %v969_v22 = vadd.f32 %v290_v19, %v235_v17 }
  0xa7   :  { %v92_v25 = vpop.f32.mrf.mxu3 }
  0xa8   :  { %v182_v28 = vrot.slane %v92_v25, 7  ;;  %v169_v29 = vpop.f32.mrf.mxu2  ;;  %v450_v30 = vadd.f32 %v427_v60, %v969_v22  ;;  %v546_v39 = vadd.f32 %v523_v8, %v969_v22 }
  0xa9   :  { %v243_v31 = vrot.slane %v169_v29, 1 }
  0xaa   :  { %v191_v34 = vsel %vm185_vm1, %v182_v28, %v177_v2  ;;  %v462_v35 = vsel %vm61_vm0, %v450_v30, -inf  ;;  %v131_v52 = vpop.f32.mrf.mxu1  ;;  %v333_v2 = vpop.permute.xlu2 %332  ;;  %v558_v6 = vsel %vm61_vm0, %v546_v39, -inf }
  0xab   :  { %v228_v37 = vmul.f32 %v201_v44, %v191_v34  ;;  %v249_v38 = vsel %vm246_vm2, %v242_v13, %v243_v31  ;;  %v463_v55 = vrot.slane %v462_v35, 4  ;;  %v231_v44 = vmul.f32 %v941_v46, %v188_v36 }
  0xac   :  { %v291_v48 = vmul.f32 %v937_v42, %v249_v38  ;;  %v186_v42 = vsel %vm185_vm1, %v181_v27, %v182_v28  ;;  %v559_v17 = vrot.slane %v558_v6, 4 }
  0xad   :  { %v234_v59 = vadd.f32 %v228_v37, %v121_v51  ;;  %v990_v60 = vpop.permute.xlu1 %446  ;;  %v992_v62 = vpop.permute.xlu0 %532  ;;  %v464_v1 = vmax.f32 %v462_v35, %v463_v55  ;;  %v233_v36 = vmul.f32 %v935_v41, %v186_v42  ;;  %v238_v42 = vadd.f32 %v232_v5, %v131_v52 }
  0xae   :  { %v297_v0 = vadd.f32 %v291_v48, %v236_v47 }
  0xaf   :  { %v295_v3 = vadd.f32 %v289_v58, %v234_v59  ;;  %v465_v10 = vrot.slane %v464_v1, 2  ;;  %v560_v59 = vmax.f32 %v558_v6, %v559_v17 }
  0xb0   :  { %v352_v8 = vadd.f32 %v333_v2, %v297_v0  ;;  %v451_v49 = vadd.f32 %v943_v50, %v297_v0  ;;  %v547_v51 = vadd.f32 %v528_v21, %v297_v0  ;;  %v172_v9 = vpop.f32.mrf.mxu2 }
  0xb1   :  { %v350_v11 = vadd.f32 %v953_v61, %v295_v3  ;;  %v449_v46 = vadd.f32 %v422_v7, %v295_v3  ;;  %v545_v12 = vadd.f32 %v518_v4, %v295_v3  ;;  %v244_v13 = vrot.slane %v172_v9, 1 }
  0xb2   :  { %v370_v15 = vsel %vm61_vm0, %v352_v8, -inf  ;;  %v469_v40 = vsel %vm61_vm0, %v451_v49, -inf  ;;  %v565_v16 = vsel %vm61_vm0, %v547_v51, -inf  ;;  %v466_v30 = vmax.f32 %v464_v1, %v465_v10  ;;  %v133_v47 = vpop.f32.mrf.mxu1 }
  0xb3   :  { %v356_v19 = vsel %vm61_vm0, %v350_v11, -inf  ;;  %v455_v23 = vsel %vm61_vm0, %v449_v46, -inf  ;;  %v551_v50 = vsel %vm61_vm0, %v545_v12, -inf  ;;  %v371_v21 = vrot.slane %v370_v15, 4 }
  0xb4   :  { %v357_v24 = vrot.slane %v356_v19, 4  ;;  %v456_v25 = vrot.slane %v455_v23, 4  ;;  %v552_v61 = vrot.slane %v551_v50, 4  ;;  %v470_v7 = vrot.slane %v469_v40, 4 }
  0xb5   :  { %v372_v4 = vmax.f32 %v370_v15, %v371_v21  ;;  %v566_v27 = vrot.slane %v565_v16, 4  ;;  %v248_v28 = vsel %vm246_vm2, %v243_v31, %v244_v13  ;;  %v328_v29 = vpop.permute.xlu1 %327  ;;  %v543_v32 = vpop.permute.xlu0 %542  ;;  %v467_v2 = vrot.slane %v466_v30, 1 }
  0xb6   :  { %v358_v33 = vmax.f32 %v356_v19, %v357_v24  ;;  %v457_v34 = vmax.f32 %v455_v23, %v456_v25  ;;  %v553_v35 = vmax.f32 %v551_v50, %v552_v61  ;;  %v471_v38 = vmax.f32 %v469_v40, %v470_v7 }
  0xb7   :  { %v373_v37 = vrot.slane %v372_v4, 2  ;;  %v567_v39 = vmax.f32 %v565_v16, %v566_v27  ;;  %v351_v48 = vadd.f32 %v328_v29, %v969_v22  ;;  %v292_v58 = vmul.f32 %v947_v54, %v248_v28  ;;  %v348_v27 = vpop.permute.xlu2 %347 }
  0xb8   :  { %v359_v43 = vrot.slane %v358_v33, 2  ;;  %v554_v55 = vrot.slane %v553_v35, 2  ;;  %v458_v31 = vrot.slane %v457_v34, 2  ;;  %v174_v3 = vpop.f32.mrf.mxu2  ;;  %v237_v8 = vadd.f32 %v231_v44, %v961_v14 }
  0xb9   :  { %v568_v0 = vrot.slane %v567_v39, 2  ;;  %v363_v1 = vsel %vm61_vm0, %v351_v48, -inf  ;;  %v239_v49 = vadd.f32 %v233_v36, %v133_v47  ;;  %v1016_v9 = vmax.f32 %v372_v4, %v373_v37 }
  0xba   :  { %v555_v41 = vmax.f32 %v553_v35, %v554_v55  ;;  %v1014_v51 = vmax.f32 %v358_v33, %v359_v43  ;;  %v472_v22 = vrot.slane %v471_v38, 2  ;;  %v364_v10 = vrot.slane %v363_v1, 4 }
  0xbb   :  { %v468_v11 = vmax.f32 %v466_v30, %v467_v2  ;;  %v561_v54 = vrot.slane %v560_v59, 2  ;;  %v245_v6 = vrot.slane %v174_v3, 1  ;;  %v298_v46 = vadd.f32 %v292_v58, %v237_v8 }
  0xbc   :  { %v1018_v12 = vmax.f32 %v457_v34, %v458_v31  ;;  %v569_v15 = vmax.f32 %v567_v39, %v568_v0  ;;  %v365_v40 = vmax.f32 %v363_v1, %v364_v10  ;;  %v556_v17 = vrot.slane %v555_v41, 1 }
  0xbd   :  { %v338_v16 = vpop.permute.xlu0 %337  ;;  %v562_v14 = vmax.f32 %v560_v59, %v561_v54  ;;  %v247_v52 = vsel %vm246_vm2, %v244_v13, %v245_v6  ;;  %v252_v44 = vsel %vm246_vm2, %v245_v6, %v240_v26  ;;  %v1026_v19 = vmax.f32 %v471_v38, %v472_v22  ;;  %v343_v4 = vpop.permute.xlu1 %342 }
  0xbe   :  { %v353_v5 = vadd.f32 %v338_v16, %v298_v46  ;;  %v366_v23 = vrot.slane %v365_v40, 2  ;;  %v293_v50 = vmul.f32 %v945_v53, %v247_v52  ;;  %v294_v21 = vmul.f32 %v939_v45, %v252_v44 }
  0xbf   :  { %v361_v24 = vrot.slane %v1014_v51, 1  ;;  %v1031_v25 = vadd.f32 -100.0, %v468_v11  ;;  %v563_v61 = vrot.slane %v562_v14, 1  ;;  %v452_v26 = vadd.f32 %v949_v56, %v298_v46 }
  0xc0   :  { %v377_v13 = vsel %vm61_vm0, %v353_v5, -inf  ;;  %v367_v7 = vmax.f32 %v365_v40, %v366_v23  ;;  %v300_v57 = vadd.f32 %v294_v21, %v239_v49  ;;  %v299_v63 = vadd.f32 %v293_v50, %v238_v42 }
  0xc1   :  { %v378_v28 = vrot.slane %v377_v13, 4  ;;  %v548_v29 = vadd.f32 %v992_v62, %v298_v46  ;;  %v557_v53 = vmax.f32 %v555_v41, %v556_v17  ;;  %v570_v30 = vrot.slane %v569_v15, 1 }
  0xc2   :  { %v368_v45 = vrot.slane %v367_v7, 1  ;;  %v355_v33 = vadd.f32 %v348_v27, %v300_v57  ;;  %v454_v34 = vadd.f32 %v990_v60, %v300_v57  ;;  %v550_v35 = vadd.f32 %v543_v32, %v300_v57 }
  0xc3   :  { %v564_v36 = vmax.f32 %v562_v14, %v563_v61  ;;  %v354_v37 = vadd.f32 %v343_v4, %v299_v63  ;;  %v453_v38 = vadd.f32 %v967_v20, %v299_v63  ;;  %v549_v39 = vadd.f32 %v965_v18, %v299_v63  ;;  %v1050_v20 = vld [vmem:[%s1125_s5] ss:$0 sm:$0xff]  ;;  %s770_s5 = smov 64  }
  0xc4   :  { %v369_v47 = vmax.f32 %v367_v7, %v368_v45  ;;  %v391_v56 = vsel %vm61_vm0, %v355_v33, -inf  ;;  %v586_v48 = vsel %vm61_vm0, %v550_v35, -inf  ;;  %v476_v62 = vsel %vm61_vm0, %v452_v26, -inf }
  0xc5   :  { %v1043_v43 = vsel %vm61_vm0, %v454_v34, -inf  ;;  %v587_v55 = vrot.slane %v586_v48, 4  ;;  %v384_v60 = vsel %vm61_vm0, %v354_v37, -inf  ;;  %v572_v32 = vsel %vm61_vm0, %v548_v29, -inf }
  0xc6   :  { %v734_v18 = vadd.f32 -100.0, %v369_v47  ;;  %v385_v58 = vrot.slane %v384_v60, 4  ;;  %v483_v59 = vsel %vm61_vm0, %v453_v38, -inf  ;;  %v579_v31 = vsel %vm61_vm0, %v549_v39, -inf }
  0xc7   :  { %v392_v0 = vrot.slane %v391_v56, 4  ;;  %v484_v1 = vrot.slane %v483_v59, 4  ;;  %v580_v2 = vrot.slane %v579_v31, 4  ;;  %v379_v3 = vmax.f32 %v377_v13, %v378_v28 }
  0xc8   :  { %v1055_v8 = vadd.f32 %v1050_v20, %v734_v18  ;;  %v386_v41 = vmax.f32 %v384_v60, %v385_v58  ;;  %v477_v42 = vrot.slane %v476_v62, 4  ;;  %v573_v49 = vrot.slane %v572_v32, 4 }
  0xc9   :  { %v581_v22 = vmax.f32 %v579_v31, %v580_v2  ;;  %v380_v10 = vrot.slane %v379_v3, 2  ;;  %v571_v11 = vmax.f32 %v569_v15, %v570_v30  ;;  %v588_v54 = vmax.f32 %v586_v48, %v587_v55 }
  0xca   :  { %v746_v6 = vadd.f32 -100.0, %v564_v36  ;;  %v387_v46 = vrot.slane %v386_v41, 2  ;;  %v478_v40 = vmax.f32 %v476_v62, %v477_v42  ;;  %v574_v16 = vmax.f32 %v572_v32, %v573_v49 }
  0xcb   :  { %v491_v17 = vrot.slane %v1043_v43, 4  ;;  %v582_v14 = vrot.slane %v581_v22, 2  ;;  %v381_v52 = vmax.f32 %v379_v3, %v380_v10  ;;  %v589_v44 = vrot.slane %v588_v54, 2 }
  0xcc   :  { %v1058_v5 = vmax.f32 %v391_v56, %v392_v0  ;;  %v388_v23 = vmax.f32 %v386_v41, %v387_v46  ;;  %v485_v50 = vmax.f32 %v483_v59, %v484_v1  ;;  %v575_v21 = vrot.slane %v574_v16, 2 }
  0xcd   :  { %v382_v61 = vrot.slane %v381_v52, 1  ;;  %v583_v13 = vmax.f32 %v581_v22, %v582_v14  ;;  %v590_v7 = vmax.f32 %v588_v54, %v589_v44  ;;  %v745_v57 = vadd.f32 -100.0, %v557_v53 }
  0xce   :  { %v389_v15 = vrot.slane %v388_v23, 1  ;;  %v479_v4 = vrot.slane %v478_v40, 2  ;;  %v576_v63 = vmax.f32 %v574_v16, %v575_v21  ;;  %v747_v26 = vadd.f32 -100.0, %v571_v11 }
  0xcf   :  { %v383_v27 = vmax.f32 %v381_v52, %v382_v61  ;;  %v584_v28 = vrot.slane %v583_v13, 1  ;;  %v591_v29 = vrot.slane %v590_v7, 1  ;;  %v599_v30 = vadd.f32 %v1050_v20, %v745_v57 }
  0xd0   :  { %v390_v45 = vmax.f32 %v388_v23, %v389_v15  ;;  %v577_v33 = vrot.slane %v576_v63, 1  ;;  %v600_v34 = vadd.f32 %v1050_v20, %v746_v6  ;;  %v601_v35 = vadd.f32 %v1050_v20, %v747_v26 }
  0xd1   :  { %v414_v36 = vmax.f32 %v1055_v8, 0.0  ;;  %v736_v37 = vadd.f32 -100.0, %v383_v27  ;;  %v585_v38 = vmax.f32 %v583_v13, %v584_v28  ;;  %v592_v53 = vmax.f32 %v590_v7, %v591_v29 }
  0xd2   :  { %v737_v39 = vadd.f32 -100.0, %v390_v45  ;;  %v486_v47 = vrot.slane %v485_v50, 2  ;;  %v578_v56 = vmax.f32 %v576_v63, %v577_v33  ;;  %v606_v48 = vmax.f32 %v600_v34, 0.0 }
  0xd3   :  { %v1065_v62 = vadd.f32 %v1050_v20, %v736_v37  ;;  %v749_v55 = vadd.f32 -100.0, %v585_v38  ;;  %v750_v60 = vadd.f32 -100.0, %v592_v53  ;;  %v607_v32 = vmax.f32 %v601_v35, 0.0 }
  0xd4   :  { %v1068_v18 = vadd.f32 %v1050_v20, %v737_v39  ;;  %v480_v58 = vmax.f32 %v478_v40, %v479_v4  ;;  %v748_v59 = vadd.f32 -100.0, %v578_v56  ;;  %v605_v31 = vmax.f32 %v599_v30, 0.0 }
  0xd5   :  { %v603_v0 = vadd.f32 %v1050_v20, %v749_v55  ;;  %v604_v1 = vadd.f32 %v1050_v20, %v750_v60  ;;  %v658_v3 = vrot.slane %v606_v48, 7  ;;  %v660_v49 = vrot.slane %v607_v32, 6 }
  0xd6   :  { %v602_v2 = vadd.f32 %v1050_v20, %v748_v59  ;;  %v460_v11 = vrot.slane %v1018_v12, 1  ;;  %v474_v54 = vrot.slane %v1026_v19, 1  ;;  %v481_v16 = vrot.slane %v480_v58, 1 }
  0xd7   :  { %v609_v41 = vmax.f32 %v603_v0, 0.0  ;;  %v610_v42 = vmax.f32 %v604_v1, 0.0  ;;  %v659_v10 = vsel %vm618_vm3, %v658_v3, %v605_v31  ;;  %v487_v23 = vmax.f32 %v485_v50, %v486_v47 }
  0xd8   :  { %v608_v22 = vmax.f32 %v602_v2, 0.0  ;;  %v661_v6 = vsel %vm621_vm4, %v660_v49, %v659_v10  ;;  %v461_v52 = vmax.f32 %v1018_v12, %v460_v11  ;;  %v475_v44 = vmax.f32 %v1026_v19, %v474_v54 }
  0xd9   :  { %v664_v46 = vrot.slane %v609_v41, 4  ;;  %v666_v40 = vrot.slane %v610_v42, 3  ;;  %v482_v21 = vmax.f32 %v480_v58, %v481_v16  ;;  %v492_v61 = vmax.f32 %v1043_v43, %v491_v17 }
  0xda   :  { %v662_v14 = vrot.slane %v608_v22, 5  ;;  %v504_v13 = vadd.f32 %v1050_v20, %v1031_v25  ;;  %v362_v7 = vmax.f32 %v1014_v51, %v361_v24  ;;  %v488_v15 = vrot.slane %v487_v23, 1 }
  0xdb   :  { %v739_v4 = vadd.f32 -100.0, %v461_v52  ;;  %v741_v12 = vadd.f32 -100.0, %v475_v44  ;;  %v493_v50 = vrot.slane %v492_v61, 2  ;;  %v742_v63 = vadd.f32 -100.0, %v482_v21 }
  0xdc   :  { %v663_v57 = vsel %vm624_vm5, %v662_v14, %v661_v6  ;;  %v510_v26 = vmax.f32 %v504_v13, 0.0  ;;  %v489_v43 = vmax.f32 %v487_v23, %v488_v15  ;;  %v375_v28 = vrot.slane %v1016_v9, 1 }
  0xdd   :  { %v665_v19 = vsel %vm627_vm6, %v664_v46, %v663_v57  ;;  %v503_v17 = vadd.f32 %v1050_v20, %v739_v4  ;;  %v505_v25 = vadd.f32 %v1050_v20, %v741_v12  ;;  %v494_v51 = vmax.f32 %v492_v61, %v493_v50 }
  0xde   :  { %v667_v27 = vsel %vm630_vm7, %v666_v40, %v665_v19  ;;  %v506_v24 = vadd.f32 %v1050_v20, %v742_v63  ;;  %v394_v29 = vrot.slane %v1058_v5, 2  ;;  %v743_v30 = vadd.f32 -100.0, %v489_v43 }
  0xdf   :  { %668 = vrot.lane.b32.xlu1 %v667_v27, %s770_s5  ;;  %v509_v45 = vmax.f32 %v503_v17, 0.0  ;;  %v511_v33 = vmax.f32 %v505_v25, 0.0  ;;  %v733_v34 = vadd.f32 -100.0, %v362_v7  ;;  %v495_v35 = vrot.slane %v494_v51, 1 }
  0xe0   :  { %v512_v37 = vmax.f32 %v506_v24, 0.0  ;;  %v395_v38 = vmax.f32 %v1058_v5, %v394_v29  ;;  %v617_v53 = vrot.slane %v414_v36, 7  ;;  %v507_v39 = vadd.f32 %v1050_v20, %v743_v30 }
  0xe1   :  { %v639_v47 = vrot.slane %v510_v26, 7  ;;  %v407_v56 = vadd.f32 %v1050_v20, %v733_v34  ;;  %v496_v48 = vmax.f32 %v494_v51, %v495_v35  ;;  %v376_v60 = vmax.f32 %v1016_v9, %v375_v28 }
  0xe2   :  { %v396_v55 = vrot.slane %v395_v38, 1  ;;  %v513_v32 = vmax.f32 %v507_v39, 0.0  ;;  %v641_v59 = vrot.slane %v511_v33, 6  ;;  %v643_v1 = vrot.slane %v512_v37, 5 }
  0xe3   :  { %v640_v58 = vsel %vm618_vm3, %v639_v47, %v509_v45  ;;  %v413_v31 = vmax.f32 %v407_v56, 0.0  ;;  %v744_v0 = vadd.f32 -100.0, %v496_v48  ;;  %v735_v2 = vadd.f32 -100.0, %v376_v60 }
  0xe4   :  { %v397_v5 = vmax.f32 %v395_v38, %v396_v55  ;;  %v416_v8 = vmax.f32 %v1065_v62, 0.0  ;;  %v645_v36 = vrot.slane %v513_v32, 4  ;;  %v417_v41 = vmax.f32 %v1068_v18, 0.0 }
  0xe5   :  { %v619_v3 = vsel %vm618_vm3, %v617_v53, %v413_v31  ;;  %v508_v42 = vadd.f32 %v1050_v20, %v744_v0  ;;  %v409_v9 = vadd.f32 %v1050_v20, %v735_v2  ;;  %v642_v22 = vsel %vm621_vm4, %v641_v59, %v640_v58 }
  0xe6   :  { %v738_v49 = vadd.f32 -100.0, %v397_v5  ;;  %v644_v11 = vsel %vm624_vm5, %v643_v1, %v642_v22  ;;  %v623_v46 = vrot.slane %v416_v8, 5  ;;  %v626_v14 = vrot.slane %v417_v41, 4 }
  0xe7   :  { %v514_v10 = vmax.f32 %v508_v42, 0.0  ;;  %v415_v6 = vmax.f32 %v409_v9, 0.0  ;;  %v646_v62 = vsel %vm627_vm6, %v645_v36, %v644_v11 }
  0xe8   :  { %v412_v54 = vadd.f32 %v1050_v20, %v738_v49 }
  0xe9   :  { %v647_v40 = vrot.slane %v514_v10, 3  ;;  %v620_v18 = vrot.slane %v415_v6, 6 }
  0xea   :  { %v418_v16 = vmax.f32 %v412_v54, 0.0 }
  0xeb   :  { %v648_v52 = vsel %vm630_vm7, %v647_v40, %v646_v62  ;;  %v622_v44 = vsel %vm621_vm4, %v620_v18, %v619_v3 }
  0xec   :  { %649 = vrot.lane.b32.xlu0 %v648_v52, %s771_s20  ;;  %v629_v23 = vrot.slane %v418_v16, 3  ;;  %v625_v21 = vsel %vm624_vm5, %v623_v46, %v622_v44 }
  0xed   :  { %v628_v61 = vsel %vm627_vm6, %v626_v14, %v625_v21 }
  0xee   :  { %v631_v20 = vsel %vm630_vm7, %v629_v23, %v628_v61 }
 0x151   :  { %v669_v13 = vpop.permute.xlu1 %668 }
 0x15e   :  { %v650_v7 = vpop.permute.xlu0 %649 }
 0x15f   :  { %v671_v57 = vsel %vm61_vm0, %v631_v20, %v650_v7 }
 0x160   :  { %v673_v15 = vsel %vm672_vm8, %v671_v57, %v669_v13 }
 0x161   :  { %675 = vst.msk [vmem:[%s1126_s6] sm:$0x3f] %vm674_vm9, %v673_v15 }

</bundles_post_ra>
